<compile_context>
chip_gen: v6e
topology: v6e:2x2x1
jax: 0.10.0
libtpu: 0.0.40
codegen_flags: <defaults>
</compile_context>

<pallas_src>
import functools
import math

import jax
import jax.numpy as jnp
import numpy as np
from jax import lax
from jax.experimental import pallas as pl
from jax.experimental.pallas import tpu as pltpu

# ---- module hyper-parameters (small, consistent with the torch module) ----
C = 32                  # gate_channels
RED = 16                # reduction_ratio
CRED = C // RED         # hidden width of the channel-gate MLP (= 2)
H = 16
W = 16
HW = H * W              # 256 -> two full f32 vregs of lanes
KSZ = 7                 # spatial-gate conv kernel size
PAD = (KSZ - 1) // 2
BN_EPS = 1e-5


def _sigmoid(v):
    return 1.0 / (1.0 + jnp.exp(-v))


# ------------------------------- kernel ------------------------------------
def cbam_kernel(x_ref, w1_ref, b1_ref, w2_ref, b2_ref,
                cm_max_ref, cm_mean_ref, bn_ref, o_ref, *, bt, c, hw):
    x = x_ref[...].astype(jnp.float32)                         # (bt*c, hw)

    # ---------------- ChannelGate ----------------
    # Global avg / max pooling over the spatial (lane) axis.
    avg = jnp.mean(x, axis=-1, keepdims=True)                  # (bt*c, 1)
    mx = jnp.max(x, axis=-1, keepdims=True)                    # (bt*c, 1)
    pooled = jnp.concatenate([avg, mx], axis=1)                # (bt*c, 2)

    # Shared MLP Linear(C, C//r) -> ReLU -> Linear(C//r, C), applied per
    # sample.  The per-sample structure is encoded in block-diagonal weight
    # matrices (kron(I_bt, W)), so both pooling branches and all samples are
    # handled by two matmuls with no in-kernel transpose.
    hid = jnp.maximum(
        jnp.dot(w1_ref[...], pooled, preferred_element_type=jnp.float32)
        + b1_ref[...], 0.0)                                    # (bt*CRED, 2)
    att = jnp.dot(w2_ref[...], hid, preferred_element_type=jnp.float32) \
        + b2_ref[...]                                          # (bt*c, 2)
    # avg-branch + max-branch logits (each column already includes +b2,
    # matching mlp(avg) + mlp(max) in the reference module).
    gate = _sigmoid(att[:, 0:1] + att[:, 1:2])                 # (bt*c, 1)
    x_ch = x * gate                                            # (bt*c, hw)

    # ---------------- SpatialGate ----------------
    # Tile-aligned view: c = 32 sublanes per sample (multiple of 8).
    x3 = x_ch.reshape(bt, c, hw)                               # (bt, c, hw)
    cmax = jnp.max(x3, axis=1)                                 # (bt, hw)
    cmean = jnp.mean(x3, axis=1)                               # (bt, hw)

    # 7x7 conv (zero pad 3) folded into two matmuls against precomputed mats.
    sconv = (jnp.dot(cmax, cm_max_ref[...], preferred_element_type=jnp.float32)
             + jnp.dot(cmean, cm_mean_ref[...], preferred_element_type=jnp.float32))
    sconv = sconv * bn_ref[0] + bn_ref[1]                      # eval-mode BN (folded)
    s_scale = _sigmoid(sconv)                                  # (bt, hw)

    out = x3 * s_scale[:, None, :]                             # (bt, c, hw)
    o_ref[...] = out.reshape(bt * c, hw).astype(o_ref.dtype)


# ------------------------------- wrapper ------------------------------------
def cbam_forward(x_nchw, kp, *, block_b=None):
    B, c, h, w = x_nchw.shape
    assert c == C and h == H and w == W
    if block_b is None:
        # Largest divisor of B up to 32 samples per step (~1 MiB x-tile).
        block_b = max(d for d in range(1, min(B, 32) + 1) if B % d == 0)
    assert B % block_b == 0
    bt = block_b

    # NCHW -> (B*C, H*W): a pure reshape (no transpose), lane-dense last dim.
    x2 = x_nchw.reshape(B * C, HW)

    # Fold the per-sample shared MLP into block-diagonal matrices (trace time).
    eye = jnp.eye(bt, dtype=jnp.float32)
    w1_blk = jnp.kron(eye, kp["w1"])                   # (bt*CRED, bt*C)
    w2_blk = jnp.kron(eye, kp["w2"])                   # (bt*C, bt*CRED)
    b1_blk = jnp.tile(kp["b1"], bt).reshape(bt * CRED, 1)
    b2_blk = jnp.tile(kp["b2"], bt).reshape(bt * C, 1)

    kern = functools.partial(cbam_kernel, bt=bt, c=C, hw=HW)

    out2 = pl.pallas_call(
        kern,
        out_shape=jax.ShapeDtypeStruct((B * C, HW), jnp.float32),
        grid=(B // bt,),
        in_specs=[
            pl.BlockSpec((bt * C, HW), lambda i: (i, 0)),          # x
            pl.BlockSpec((bt * CRED, bt * C), lambda i: (0, 0)),   # block-diag W1
            pl.BlockSpec((bt * CRED, 1), lambda i: (0, 0)),        # tiled b1 (column)
            pl.BlockSpec((bt * C, bt * CRED), lambda i: (0, 0)),   # block-diag W2
            pl.BlockSpec((bt * C, 1), lambda i: (0, 0)),           # tiled b2 (column)
            pl.BlockSpec((HW, HW), lambda i: (0, 0)),              # conv matrix (max map)
            pl.BlockSpec((HW, HW), lambda i: (0, 0)),              # conv matrix (mean map)
            pl.BlockSpec(memory_space=pltpu.MemorySpace.SMEM),     # folded BN [scale, bias]
        ],
        out_specs=pl.BlockSpec((bt * C, HW), lambda i: (i, 0)),
        compiler_params=pltpu.CompilerParams(dimension_semantics=("parallel",)),
    )(x2, w1_blk, b1_blk, w2_blk, b2_blk,
      kp["cmat_max"], kp["cmat_mean"], kp["bn"])

    return out2.reshape(B, C, H, W)


# --------------------- weight preprocessing helpers --------------------------
def build_conv_matrices(wconv):
    """Fold the 2->1 channel 7x7 conv (zero padding 3) into two (HW, HW) mats.

    m_max[p, q]  : contribution of the channel-max map at flat input position p
                   to flat output position q.
    m_mean[p, q] : same for the channel-mean map.
    """
    wc = np.asarray(wconv, np.float64)
    m_max = np.zeros((HW, HW), np.float64)
    m_mean = np.zeros((HW, HW), np.float64)
    for qy in range(H):
        for qx in range(W):
            q = qy * W + qx
            for dy in range(-PAD, PAD + 1):
                for dx in range(-PAD, PAD + 1):
                    py, px = qy + dy, qx + dx
                    if 0 <= py < H and 0 <= px < W:
                        p = py * W + px
                        m_max[p, q] += wc[0, 0, dy + PAD, dx + PAD]
                        m_mean[p, q] += wc[0, 1, dy + PAD, dx + PAD]
    return jnp.asarray(m_max, jnp.float32), jnp.asarray(m_mean, jnp.float32)


# --------------------- deterministic parameter init -------------------------
def init_params(key):
    ks = jax.random.split(key, 5)
    w1 = jax.random.normal(ks[0], (CRED, C), jnp.float32) / np.sqrt(float(C))
    b1 = jax.random.normal(ks[1], (CRED,), jnp.float32) * 0.1
    w2 = jax.random.normal(ks[2], (C, CRED), jnp.float32) / np.sqrt(float(CRED))
    b2 = jax.random.normal(ks[3], (C,), jnp.float32) * 0.1
    wconv = jax.random.normal(ks[4], (1, 2, KSZ, KSZ), jnp.float32) / float(KSZ)

    # BatchNorm2d(1): freshly-initialized affine + running stats, eval mode.
    bn_gamma, bn_beta = 1.0, 0.0
    bn_mean, bn_var = 0.0, 1.0

    torch_p = dict(w1=w1, b1=b1, w2=w2, b2=b2, wconv=wconv,
                   bn_gamma=bn_gamma, bn_beta=bn_beta,
                   bn_mean=bn_mean, bn_var=bn_var)

    bn_s = bn_gamma / np.sqrt(bn_var + BN_EPS)
    bn_t = bn_beta - bn_mean * bn_s
    cmat_max, cmat_mean = build_conv_matrices(wconv)
    kernel_p = dict(
        w1=w1, b1=b1, w2=w2, b2=b2,
        cmat_max=cmat_max, cmat_mean=cmat_mean,
        bn=jnp.asarray([bn_s, bn_t], jnp.float32),
    )
    return torch_p, kernel_p


# --------------------------- plain-JAX reference ----------------------------
def reference(x, p):
    # ChannelGate
    avg = jnp.mean(x, axis=(2, 3))                       # (B, C)
    mx = jnp.max(x, axis=(2, 3))                         # (B, C)

    def mlp(v):
        hdd = jnp.maximum(v @ p["w1"].T + p["b1"], 0.0)
        return hdd @ p["w2"].T + p["b2"]

    att = mlp(avg) + mlp(mx)
    c_scale = jax.nn.sigmoid(att)[:, :, None, None]
    xc = x * c_scale

    # SpatialGate
    cmax = jnp.max(xc, axis=1, keepdims=True)
    cmean = jnp.mean(xc, axis=1, keepdims=True)
    comp = jnp.concatenate([cmax, cmean], axis=1)        # (B, 2, H, W)
    conv = lax.conv_general_dilated(
        comp, p["wconv"], (1, 1), ((PAD, PAD), (PAD, PAD)),
        dimension_numbers=("NCHW", "OIHW", "NCHW"))
    bn = ((conv - p["bn_mean"]) / jnp.sqrt(p["bn_var"] + BN_EPS)
          * p["bn_gamma"] + p["bn_beta"])
    return xc * jax.nn.sigmoid(bn)


# ------------------------------------ main ----------------------------------
if __name__ == "__main__":
    key = jax.random.PRNGKey(0)
    kx, kparam = jax.random.split(key)
    x = jax.random.normal(kx, (2, C, H, W), jnp.float32)

    torch_p, kernel_p = init_params(kparam)

    out = cbam_forward(x, kernel_p)
    out = jax.block_until_ready(out)

    ref = reference(x, torch_p)
    err = float(jnp.max(jnp.abs(out - ref)))
    assert out.shape == x.shape
    if err < 1e-3:
        print("KERNEL_OK")
    else:
        print(f"MISMATCH max_abs_err={err}")
</pallas_src>

<mosaic_0001>
module attributes {stable_mosaic.version = 11 : i64} {
  func.func @cbam_kernel(%arg0: i32, %arg1: memref<64x256xf32, #tpu.memory_space<vmem>>, %arg2: memref<4x64xf32, #tpu.memory_space<vmem>>, %arg3: memref<4x1xf32, #tpu.memory_space<vmem>>, %arg4: memref<64x4xf32, #tpu.memory_space<vmem>>, %arg5: memref<64x1xf32, #tpu.memory_space<vmem>>, %arg6: memref<256x256xf32, #tpu.memory_space<vmem>>, %arg7: memref<256x256xf32, #tpu.memory_space<vmem>>, %arg8: memref<2xf32, #tpu.memory_space<smem>>, %arg9: memref<64x256xf32, #tpu.memory_space<vmem>>) attributes {dimension_semantics = [#tpu.dimension_semantics<parallel>], iteration_bounds = array<i64: 1>, scalar_prefetch = 0 : i64, scratch_operands = 0 : i64, tpu.core_type = #tpu.core_type<tc>, window_params = [{transform_indices = @transform_0, window_bounds = array<i64: 64, 256>}, {pipeline_mode = #tpu.pipeline_mode<synchronous>, transform_indices = @transform_1, window_bounds = array<i64: 4, 64>}, {pipeline_mode = #tpu.pipeline_mode<synchronous>, transform_indices = @transform_2, window_bounds = array<i64: 4, 1>}, {pipeline_mode = #tpu.pipeline_mode<synchronous>, transform_indices = @transform_3, window_bounds = array<i64: 64, 4>}, {pipeline_mode = #tpu.pipeline_mode<synchronous>, transform_indices = @transform_4, window_bounds = array<i64: 64, 1>}, {pipeline_mode = #tpu.pipeline_mode<synchronous>, transform_indices = @transform_5, window_bounds = array<i64: 256, 256>}, {pipeline_mode = #tpu.pipeline_mode<synchronous>, transform_indices = @transform_6, window_bounds = array<i64: 256, 256>}, {transform_indices = @transform_7, window_bounds = array<i64: 2>}, {transform_indices = @transform_8, window_bounds = array<i64: 64, 256>}]} {
    %c0 = arith.constant 0 : index
    %c0_0 = arith.constant 0 : index
    %0 = vector.load %arg1[%c0, %c0_0] : memref<64x256xf32, #tpu.memory_space<vmem>>, vector<64x256xf32>
    %cst = arith.constant dense<0.000000e+00> : vector<64xf32>
    %1 = vector.multi_reduction <add>, %0, %cst [1] : vector<64x256xf32> to vector<64xf32>
    %2 = vector.shape_cast %1 : vector<64xf32> to vector<64x1xf32>
    %cst_1 = arith.constant 2.560000e+02 : f32
    %3 = vector.broadcast %cst_1 : f32 to vector<64x1xf32>
    %4 = arith.divf %2, %3 : vector<64x1xf32>
    %cst_2 = arith.constant dense<0xFF800000> : vector<64xf32>
    %5 = vector.multi_reduction <maximumf>, %0, %cst_2 [1] : vector<64x256xf32> to vector<64xf32>
    %6 = vector.shape_cast %5 : vector<64xf32> to vector<64x1xf32>
    %7 = tpu.concatenate %4, %6 in 1 : vector<64x1xf32>, vector<64x1xf32> -> vector<64x2xf32>
    %c0_3 = arith.constant 0 : index
    %c0_4 = arith.constant 0 : index
    %8 = vector.load %arg2[%c0_3, %c0_4] : memref<4x64xf32, #tpu.memory_space<vmem>>, vector<4x64xf32>
    %cst_5 = arith.constant dense<0.000000e+00> : vector<4x2xf32>
    %9 = tpu.matmul %8, %7, %cst_5 {dimension_numbers = #tpu.dot_dimension_numbers<[1], [0], [0], [1], [0, 0, 1, 1], [], []>} : vector<4x64xf32>, vector<64x2xf32>, vector<4x2xf32> -> vector<4x2xf32>
    %c0_6 = arith.constant 0 : index
    %c0_7 = arith.constant 0 : index
    %10 = vector.load %arg3[%c0_6, %c0_7] : memref<4x1xf32, #tpu.memory_space<vmem>>, vector<4x1xf32>
    %11 = vector.broadcast %10 : vector<4x1xf32> to vector<4x2xf32>
    %12 = arith.addf %9, %11 : vector<4x2xf32>
    %cst_8 = arith.constant 0.000000e+00 : f32
    %13 = vector.broadcast %cst_8 : f32 to vector<4x2xf32>
    %14 = arith.maximumf %12, %13 : vector<4x2xf32>
    %c0_9 = arith.constant 0 : index
    %c0_10 = arith.constant 0 : index
    %15 = vector.load %arg4[%c0_9, %c0_10] : memref<64x4xf32, #tpu.memory_space<vmem>>, vector<64x4xf32>
    %cst_11 = arith.constant dense<0.000000e+00> : vector<64x2xf32>
    %16 = tpu.matmul %15, %14, %cst_11 {dimension_numbers = #tpu.dot_dimension_numbers<[1], [0], [0], [1], [0, 0, 1, 1], [], []>} : vector<64x4xf32>, vector<4x2xf32>, vector<64x2xf32> -> vector<64x2xf32>
    %c0_12 = arith.constant 0 : index
    %c0_13 = arith.constant 0 : index
    %17 = vector.load %arg5[%c0_12, %c0_13] : memref<64x1xf32, #tpu.memory_space<vmem>>, vector<64x1xf32>
    %18 = vector.broadcast %17 : vector<64x1xf32> to vector<64x2xf32>
    %19 = arith.addf %16, %18 : vector<64x2xf32>
    %20 = vector.extract_strided_slice %19 {offsets = [0, 0], sizes = [64, 1], strides = [1, 1]} : vector<64x2xf32> to vector<64x1xf32>
    %21 = vector.extract_strided_slice %19 {offsets = [0, 1], sizes = [64, 1], strides = [1, 1]} : vector<64x2xf32> to vector<64x1xf32>
    %22 = arith.addf %20, %21 : vector<64x1xf32>
    %cst_14 = arith.constant 0.000000e+00 : f32
    %23 = vector.broadcast %cst_14 : f32 to vector<64x1xf32>
    %24 = arith.subf %23, %22 : vector<64x1xf32>
    %25 = math.exp %24 : vector<64x1xf32>
    %cst_15 = arith.constant 1.000000e+00 : f32
    %26 = vector.broadcast %cst_15 : f32 to vector<64x1xf32>
    %27 = arith.addf %26, %25 : vector<64x1xf32>
    %cst_16 = arith.constant 1.000000e+00 : f32
    %28 = vector.broadcast %cst_16 : f32 to vector<64x1xf32>
    %29 = arith.divf %28, %27 : vector<64x1xf32>
    %30 = vector.broadcast %29 : vector<64x1xf32> to vector<64x256xf32>
    %31 = arith.mulf %0, %30 : vector<64x256xf32>
    %32 = vector.shape_cast %31 : vector<64x256xf32> to vector<2x32x256xf32>
    %cst_17 = arith.constant dense<0xFF800000> : vector<2x256xf32>
    %33 = vector.multi_reduction <maximumf>, %32, %cst_17 [1] : vector<2x32x256xf32> to vector<2x256xf32>
    %cst_18 = arith.constant dense<0.000000e+00> : vector<2x256xf32>
    %34 = vector.multi_reduction <add>, %32, %cst_18 [1] : vector<2x32x256xf32> to vector<2x256xf32>
    %cst_19 = arith.constant 3.200000e+01 : f32
    %35 = vector.broadcast %cst_19 : f32 to vector<2x256xf32>
    %36 = arith.divf %34, %35 : vector<2x256xf32>
    %c0_20 = arith.constant 0 : index
    %c0_21 = arith.constant 0 : index
    %37 = vector.load %arg6[%c0_20, %c0_21] : memref<256x256xf32, #tpu.memory_space<vmem>>, vector<256x256xf32>
    %cst_22 = arith.constant dense<0.000000e+00> : vector<2x256xf32>
    %38 = tpu.matmul %33, %37, %cst_22 {dimension_numbers = #tpu.dot_dimension_numbers<[1], [0], [0], [1], [0, 0, 1, 1], [], []>} : vector<2x256xf32>, vector<256x256xf32>, vector<2x256xf32> -> vector<2x256xf32>
    %c0_23 = arith.constant 0 : index
    %c0_24 = arith.constant 0 : index
    %39 = vector.load %arg7[%c0_23, %c0_24] : memref<256x256xf32, #tpu.memory_space<vmem>>, vector<256x256xf32>
    %cst_25 = arith.constant dense<0.000000e+00> : vector<2x256xf32>
    %40 = tpu.matmul %36, %39, %cst_25 {dimension_numbers = #tpu.dot_dimension_numbers<[1], [0], [0], [1], [0, 0, 1, 1], [], []>} : vector<2x256xf32>, vector<256x256xf32>, vector<2x256xf32> -> vector<2x256xf32>
    %41 = arith.addf %38, %40 : vector<2x256xf32>
    %c0_26 = arith.constant 0 : index
    %42 = memref.load %arg8[%c0_26] : memref<2xf32, #tpu.memory_space<smem>>
    %43 = vector.broadcast %42 : f32 to vector<2x256xf32>
    %44 = arith.mulf %41, %43 : vector<2x256xf32>
    %c1 = arith.constant 1 : index
    %45 = memref.load %arg8[%c1] : memref<2xf32, #tpu.memory_space<smem>>
    %46 = vector.broadcast %45 : f32 to vector<2x256xf32>
    %47 = arith.addf %44, %46 : vector<2x256xf32>
    %cst_27 = arith.constant 0.000000e+00 : f32
    %48 = vector.broadcast %cst_27 : f32 to vector<2x256xf32>
    %49 = arith.subf %48, %47 : vector<2x256xf32>
    %50 = math.exp %49 : vector<2x256xf32>
    %cst_28 = arith.constant 1.000000e+00 : f32
    %51 = vector.broadcast %cst_28 : f32 to vector<2x256xf32>
    %52 = arith.addf %51, %50 : vector<2x256xf32>
    %cst_29 = arith.constant 1.000000e+00 : f32
    %53 = vector.broadcast %cst_29 : f32 to vector<2x256xf32>
    %54 = arith.divf %53, %52 : vector<2x256xf32>
    %55 = vector.shape_cast %54 : vector<2x256xf32> to vector<2x1x256xf32>
    %56 = vector.broadcast %55 : vector<2x1x256xf32> to vector<2x32x256xf32>
    %57 = arith.mulf %32, %56 : vector<2x32x256xf32>
    %58 = vector.shape_cast %57 : vector<2x32x256xf32> to vector<64x256xf32>
    %c0_30 = arith.constant 0 : index
    %c0_31 = arith.constant 0 : index
    %59 = vector.load %arg9[%c0_30, %c0_31] : memref<64x256xf32, #tpu.memory_space<vmem>>, vector<64x256xf32>
    tpu.vector_store %arg9[%c0_30, %c0_31], %58 {strides = array<i32>} : memref<64x256xf32, #tpu.memory_space<vmem>>, vector<64x256xf32>,
    return
  }
  func.func @transform_0(%arg0: i32) -> (i32, i32) {
    %c0_i32 = arith.constant 0 : i32
    %c0_i32_0 = arith.constant 0 : i32
    return %arg0, %c0_i32 : i32, i32
  }
  func.func @transform_1(%arg0: i32) -> (i32, i32) {
    %c0_i32 = arith.constant 0 : i32
    %c0_i32_0 = arith.constant 0 : i32
    %c0_i32_1 = arith.constant 0 : i32
    return %c0_i32, %c0_i32_0 : i32, i32
  }
  func.func @transform_2(%arg0: i32) -> (i32, i32) {
    %c0_i32 = arith.constant 0 : i32
    %c0_i32_0 = arith.constant 0 : i32
    %c0_i32_1 = arith.constant 0 : i32
    return %c0_i32, %c0_i32_0 : i32, i32
  }
  func.func @transform_3(%arg0: i32) -> (i32, i32) {
    %c0_i32 = arith.constant 0 : i32
    %c0_i32_0 = arith.constant 0 : i32
    %c0_i32_1 = arith.constant 0 : i32
    return %c0_i32, %c0_i32_0 : i32, i32
  }
  func.func @transform_4(%arg0: i32) -> (i32, i32) {
    %c0_i32 = arith.constant 0 : i32
    %c0_i32_0 = arith.constant 0 : i32
    %c0_i32_1 = arith.constant 0 : i32
    return %c0_i32, %c0_i32_0 : i32, i32
  }
  func.func @transform_5(%arg0: i32) -> (i32, i32) {
    %c0_i32 = arith.constant 0 : i32
    %c0_i32_0 = arith.constant 0 : i32
    %c0_i32_1 = arith.constant 0 : i32
    return %c0_i32, %c0_i32_0 : i32, i32
  }
  func.func @transform_6(%arg0: i32) -> (i32, i32) {
    %c0_i32 = arith.constant 0 : i32
    %c0_i32_0 = arith.constant 0 : i32
    %c0_i32_1 = arith.constant 0 : i32
    return %c0_i32, %c0_i32_0 : i32, i32
  }
  func.func @transform_7(%arg0: i32) -> i32 {
    %c0_i32 = arith.constant 0 : i32
    %c0_i32_0 = arith.constant 0 : i32
    return %c0_i32 : i32
  }
  func.func @transform_8(%arg0: i32) -> (i32, i32) {
    %c0_i32 = arith.constant 0 : i32
    %c0_i32_0 = arith.constant 0 : i32
    return %arg0, %c0_i32 : i32, i32
  }
}

</mosaic_0001>

<bundles_post_ra>
// kernel: tpu_custom_call.1
= control target key start
LH: loop header
LB: loop body
LE: loop exit
PB: predicated region body
PF: predicated region fallthrough
CT: control target
= control target key end

     0   :  { %13 = vsyncpa [#allocation3], 0  ;;  %s1630_s0 = inlined_call_operand.vmem [shape: f32[64,256], index: 0, kind: input, shape index: {}]   ;;  %s1631_s1 = inlined_call_operand.vmem [shape: f32[4,64], index: 1, kind: input, shape index: {}]   ;;  %s1632_s2 = inlined_call_operand.vmem [shape: f32[4,1], index: 2, kind: input, shape index: {}]   ;;  %s1633_s3 = inlined_call_operand.vmem [shape: f32[64,4], index: 3, kind: input, shape index: {}]   ;;  %s1634_s4 = inlined_call_operand.vmem [shape: f32[64,1], index: 4, kind: input, shape index: {}]   ;;  %s1635_s5 = inlined_call_operand.hbm [shape: f32[256,256], index: 5, kind: input, shape index: {}]   ;;  %s1636_s6 = inlined_call_operand.hbm [shape: f32[256,256], index: 6, kind: input, shape index: {}]   ;;  %s1637_s7 = inlined_call_operand.vmem [shape: f32[2], index: 7, kind: input, shape index: {}]   ;;  %s1638_s8 = inlined_call_operand.hbm [shape: f32[64,256], index: 8, kind: output, shape index: {}]  }
   0x1   :  { %14 = vsyncpa [#allocation7], 0 }
   0x2   :  { %15 = vsyncpa [#allocation5], 0 }
   0x3   :  { %16 = vsyncpa [#allocation4], 0  ;;  %s1254_s27 = smov [#allocation2]  }
   0x4   :  { %s32_s28 = sshll.u32 %s1254_s27, 4  ;;  %s33_s28 = int_to_ptr.vmem [resolvable:$true] %s32_s28 }
   0x5   :  { %s1182_s29 = scalar_lea.vmem %s33_s28, 8192  ;;  %p1187_p1 = scmp.lt.s32.totalorder %s33_s28, %s33_s28 }
   0x6   :  { %p1183_p0 = scmp.ne.s32.totalorder %s33_s28, %s1182_s29  ;;  %p1188_p2 = scmp.lt.s32.totalorder %s1182_s29, %s1182_s29 }
   0x8   :  { %p1189_p3 = por %p1188_p2, %p1187_p1 }
   0xa   :  { %p1190_p4 = pnand %p1189_p3, %p1183_p0 }
   0xc   :  { %1193 = shalt.err (!%p1190_p4)
}
   0xd   :  { %s1255_s30 = smov 256   ;;  %s1256_s9 = smov 16  }
   0xe   :  { %38 = dma.hbm_to_vmem [thread:$0]  %s1635_s5, 8192, %s33_s28, [#allocation3], %s1255_s30, %s1255_s30, %s1256_s9  }
   0xf   :  { %s1257_s12 = smov [#allocation6]   ;;  %s57_s16 = sshll.u32 %s1637_s7, 4  ;;  %s58_s16 = int_to_ptr.vmem [resolvable:$true] %s57_s16 }
  0x10   :  { %s44_s13 = sshll.u32 %s1257_s12, 4  ;;  %s45_s13 = int_to_ptr.vmem [resolvable:$true] %s44_s13 }
  0x11   :  { %s1202_s17 = scalar_lea.vmem %s45_s13, 8192  ;;  %p1207_p6 = scmp.lt.s32.totalorder %s45_s13, %s45_s13 }
  0x12   :  { %p1203_p5 = scmp.ne.s32.totalorder %s45_s13, %s1202_s17  ;;  %p1208_p7 = scmp.lt.s32.totalorder %s1202_s17, %s1202_s17 }
  0x14   :  { %p1209_p8 = por %p1208_p7, %p1207_p6 }
  0x16   :  { %p1210_p9 = pnand %p1209_p8, %p1203_p5 }
  0x18   :  { %1213 = shalt.err (!%p1210_p9)
}
  0x19   :  { %50 = dma.hbm_to_vmem [thread:$0]  %s1636_s6, 8192, %s45_s13, [#allocation7], %s1255_s30, %s1255_s30, %s1256_s9  }
  0x1a   :  { %s1214_s19 = scalar_lea.vmem %s58_s16, 16  ;;  %p1219_p11 = scmp.lt.s32.totalorder %s58_s16, %s58_s16 }
  0x1b   :  { %p1215_p10 = scmp.ne.s32.totalorder %s58_s16, %s1214_s19  ;;  %p1220_p12 = scmp.lt.s32.totalorder %s1214_s19, %s1214_s19 }
  0x1d   :  { %p1221_p13 = por %p1220_p12, %p1219_p11 }
  0x1f   :  { %p1222_p0 = pnand %p1221_p13, %p1215_p10 }
  0x21   :  { %1225 = shalt.err (!%p1222_p0)
}
  0x22   :  { %s1258_s7 = smov [#allocation8]  }
  0x23   :  { %60 = dma.vmem_to_smem %s58_s16, 16, %s1258_s7, [#allocation5]  }
  0x24   :  { %1246 = dma.done.wait [#allocation3], 8192  }
  0x25   :  { %1247 = vsyncadd [#allocation3], 4294959104 }
  0x26   :  { %1248 = dma.done.wait [#allocation7], 8192  }
  0x27   :  { %1249 = vsyncadd [#allocation7], 4294959104 }
  0x28   :  { %1250 = dma.done.wait [#allocation5], 16  }
  0x29   :  { %1251 = vsyncadd [#allocation5], 4294967280 }
  0x2a   :  { %70 = sfence }
  0x2b   :  { %v85_v0 = vld [vmem:[%s1630_s0 + $0x70] sm:$0xff]  ;;  %v86_v1 = vld [vmem:[%s1630_s0 + $0x78] sm:$0xff]  ;;  %v83_v2 = vld [vmem:[%s1630_s0 + $0x60] sm:$0xff]  ;;  %v1259_v20 = vmov 0.0   ;;  %vm1260_vm0 = vmmov 0   ;;  %v1261_v33 = vmov 0  }
  0x2c   :  { %v141_v3 = vmax.f32 %v85_v0, %v86_v1  ;;  %v108_v4 = vadd.f32 %v86_v1, %v85_v0  ;;  %v84_v5 = vld [vmem:[%s1630_s0 + $0x68] sm:$0xff]  ;;  %v81_v6 = vld [vmem:[%s1630_s0 + $0x50] sm:$0xff]  ;;  %v82_v7 = vld [vmem:[%s1630_s0 + $0x58] sm:$0xff]  ;;  %1078 = vmatprep.subr.mxu0 %v1259_v20  ;;  %1094 = vmatprep.mubr.msk.f32.mxu0 %vm1260_vm0, %v1259_v20  ;;  %vm144_vm1 = vcmask 7168   ;;  %vm160_vm2 = vcmask 523264   ;;  %s1262_s16 = smov 127  }
  0x2d   :  { %v105_v8 = vadd.f32 %v84_v5, %v83_v2  ;;  %v102_v9 = vadd.f32 %v82_v7, %v81_v6  ;;  %v79_v10 = vld [vmem:[%s1630_s0 + $0x40] sm:$0xff]  ;;  %v80_v11 = vld [vmem:[%s1630_s0 + $0x48] sm:$0xff]  ;;  %v138_v12 = vmax.f32 %v83_v2, %v84_v5  ;;  %v77_v14 = vld [vmem:[%s1630_s0 + $0x30] sm:$0xff]  ;;  %v135_v16 = vmax.f32 %v81_v6, %v82_v7  ;;  %1122 = vset.pattern.permute.xlu0 %v1261_v33  ;;  %s1059_s11 = sld [smem:[#allocation8 + $0x1]]  ;;  %s1264_s12 = smov [#allocation9]  }
  0x2e   :  { %142 = vmax.xlane.f32.xlu1 %v141_v3  ;;  %109 = vadd.xlane.f32.xlu0 %v108_v4  ;;  %v99_v13 = vadd.f32 %v80_v11, %v79_v10  ;;  %v78_v15 = vld [vmem:[%s1630_s0 + $0x38] sm:$0xff]  ;;  %v1358_v18 = vld [vmem:[%s1630_s0 + $0x20] sm:$0xff]  ;;  %v1363_v19 = vld [vmem:[%s1630_s0 + $0x28] sm:$0xff]  ;;  %v132_v21 = vmax.f32 %v79_v10, %v80_v11  ;;  %vm291_vm3 = vcmask 31744   ;;  %vm316_vm4 = vcmask 1043456   ;;  %s1035_s13 = sshll.u32 %s1264_s12, 4  ;;  %s1036_s13 = int_to_ptr.vmem [resolvable:$true] %s1035_s13 }
  0x2f   :  { %v96_v17 = vadd.f32 %v78_v15, %v77_v14  ;;  %v93_v22 = vadd.f32 %v1363_v19, %v1358_v18  ;;  %v1371_v23 = vld [vmem:[%s1630_s0 + $0x10] sm:$0xff]  ;;  %v1376_v24 = vld [vmem:[%s1630_s0 + $0x18] sm:$0xff]  ;;  %v129_v25 = vmax.f32 %v77_v14, %v78_v15  ;;  %v1383_v27 = vld [vmem:[%s1630_s0] sm:$0xff]  ;;  %v126_v29 = vmax.f32 %v1358_v18, %v1363_v19  ;;  %1123 = vset.pattern.permute.xlu1 %v1261_v33  ;;  %s1226_s14 = scalar_lea.vmem %s1036_s13, 2048  ;;  %p1231_p2 = scmp.lt.s32.totalorder %s1036_s13, %s1036_s13 }
  0x30   :  { %v90_v26 = vadd.f32 %v1376_v24, %v1371_v23  ;;  %v1388_v28 = vld [vmem:[%s1630_s0 + $0x8] sm:$0xff]  ;;  %v123_v31 = vmax.f32 %v1371_v23, %v1376_v24  ;;  %v154_v34 = vld [vmem:[%s1632_s2] sm:$0xf]  ;;  %v249_v10 = vld [vmem:[%s1634_s4 + $0x30] sm:$0xff]  ;;  %vm778_vm5 = vcmask 1041409   ;;  %p1227_p1 = scmp.ne.s32.totalorder %s1036_s13, %s1226_s14  ;;  %p1232_p3 = scmp.lt.s32.totalorder %s1226_s14, %s1226_s14 }
  0x31   :  { %v87_v30 = vadd.f32 %v1388_v28, %v1383_v27  ;;  %v120_v32 = vmax.f32 %v1383_v27, %v1388_v28  ;;  %v153_v2 = vld [vmem:[%s1631_s1] sm:$0xf]  ;;  %v244_v6 = vld [vmem:[%s1634_s4 + $0x8] sm:$0xff]  ;;  %v246_v11 = vld [vmem:[%s1634_s4 + $0x18] sm:$0xff] }
  0x32   :  { %106 = vadd.xlane.f32.xlu0 %v105_v8  ;;  %103 = vadd.xlane.f32.xlu1 %v102_v9  ;;  %v235_v4 = vld [vmem:[%s1633_s3] sm:$0xff]  ;;  %v248_v8 = vld [vmem:[%s1634_s4 + $0x28] sm:$0xff]  ;;  %v245_v9 = vld [vmem:[%s1634_s4 + $0x10] sm:$0xff]  ;;  %p1233_p4 = por %p1232_p3, %p1231_p2 }
  0x33   :  { %1099 = vmatprep.mubr.msk.f32.mxu1 %vm291_vm3, %v235_v4  ;;  %v243_v5 = vld [vmem:[%s1634_s4] sm:$0xff]  ;;  %v735_v4 = vld [vmem:[#allocation6 + $0xc8] sm:$0xff] }
  0x34   :  { %v247_v7 = vld [vmem:[%s1634_s4 + $0x20] sm:$0xff]  ;;  %p1234_p5 = pnand %p1233_p4, %p1227_p1 }
  0x36   :  { %139 = vmax.xlane.f32.xlu0 %v138_v12  ;;  %100 = vadd.xlane.f32.xlu1 %v99_v13  ;;  %v250_v12 = vld [vmem:[%s1634_s4 + $0x38] sm:$0xff] }
  0x3a   :  { %136 = vmax.xlane.f32.xlu0 %v135_v16  ;;  %97 = vadd.xlane.f32.xlu1 %v96_v17 }
  0x3e   :  { %133 = vmax.xlane.f32.xlu0 %v132_v21  ;;  %94 = vadd.xlane.f32.xlu1 %v93_v22  ;;  %v237_v21 = vld [vmem:[%s1633_s3 + $0x10] sm:$0xff]  ;;  %v238_v22 = vld [vmem:[%s1633_s3 + $0x18] sm:$0xff] }
  0x42   :  { %130 = vmax.xlane.f32.xlu0 %v129_v25  ;;  %91 = vadd.xlane.f32.xlu1 %v90_v26  ;;  %v239_v25 = vld [vmem:[%s1633_s3 + $0x20] sm:$0xff]  ;;  %v240_v26 = vld [vmem:[%s1633_s3 + $0x28] sm:$0xff] }
  0x46   :  { %127 = vmax.xlane.f32.xlu0 %v126_v29  ;;  %88 = vadd.xlane.f32.xlu1 %v87_v30  ;;  %v241_v29 = vld [vmem:[%s1633_s3 + $0x30] sm:$0xff]  ;;  %v242_v30 = vld [vmem:[%s1633_s3 + $0x38] sm:$0xff] }
  0x4a   :  { %124 = vmax.xlane.f32.xlu0 %v123_v31  ;;  %121 = vmax.xlane.f32.xlu1 %v120_v32 }
  0x5b   :  { %253 = vperm.xlu1 %1123, %v243_v5   ;;  %v670_v5 = vld [vmem:[#allocation2 + $0xc0] sm:$0xff] }
  0x5f   :  { %258 = vperm.xlu1 %1123, %v244_v6   ;;  %v734_v6 = vld [vmem:[#allocation6 + $0xc0] sm:$0xff] }
  0x60   :  { %157 = vperm.xlu0 %1122, %v154_v34  }
  0x63   :  { %273 = vperm.xlu1 %1123, %v247_v7   ;;  %v669_v7 = vld [vmem:[#allocation2 + $0xb8] sm:$0xff] }
  0x67   :  { %278 = vperm.xlu1 %1123, %v248_v8   ;;  %v733_v8 = vld [vmem:[#allocation6 + $0xb8] sm:$0xff] }
  0x6b   :  { %263 = vperm.xlu1 %1123, %v245_v9   ;;  %v668_v9 = vld [vmem:[#allocation2 + $0xb0] sm:$0xff] }
  0x6f   :  { %283 = vperm.xlu1 %1123, %v249_v10   ;;  %v732_v10 = vld [vmem:[#allocation6 + $0xb0] sm:$0xff] }
  0x73   :  { %268 = vperm.xlu1 %1123, %v246_v11   ;;  %v667_v11 = vld [vmem:[#allocation2 + $0xa8] sm:$0xff] }
  0x77   :  { %288 = vperm.xlu1 %1123, %v250_v12   ;;  %v731_v12 = vld [vmem:[#allocation6 + $0xa8] sm:$0xff] }
  0xb7   :  { %v143_v35 = vpop.xlane.xlu1 %142  ;;  %v110_v36 = vpop.xlane.xlu0 %109 }
  0xb8   :  { %v119_v37 = vmul.f32 0.00390625, %v110_v36 }
  0xba   :  { %v152_v38 = vsel %vm144_vm1, %v119_v37, %v143_v35 }
  0xbb   :  { %1079 = vmatpush3.msra.mxu0 %v152_v38  ;;  %v107_v39 = vpop.xlane.xlu0 %106  ;;  %v104_v40 = vpop.xlane.xlu1 %103 }
  0xbc   :  { %1080 = vmatprep.subr.mxu0 %v1259_v20  ;;  %v118_v41 = vmul.f32 0.00390625, %v107_v39  ;;  %v117_v45 = vmul.f32 0.00390625, %v104_v40 }
  0xbf   :  { %v140_v42 = vpop.xlane.xlu0 %139  ;;  %v101_v43 = vpop.xlane.xlu1 %100 }
  0xc0   :  { %v151_v44 = vsel %vm144_vm1, %v118_v41, %v140_v42  ;;  %v116_v49 = vmul.f32 0.00390625, %v101_v43 }
  0xc1   :  { %1081 = vmatpush3.msra.mxu0 %v151_v44 }
  0xc2   :  { %1082 = vmatprep.subr.mxu0 %v1259_v20 }
  0xc3   :  { %v137_v46 = vpop.xlane.xlu0 %136  ;;  %v98_v47 = vpop.xlane.xlu1 %97 }
  0xc4   :  { %v150_v48 = vsel %vm144_vm1, %v117_v45, %v137_v46  ;;  %v115_v53 = vmul.f32 0.00390625, %v98_v47 }
  0xc5   :  { %1083 = vmatpush3.msra.mxu0 %v150_v48 }
  0xc6   :  { %1084 = vmatprep.subr.mxu0 %v1259_v20 }
  0xc7   :  { %v134_v50 = vpop.xlane.xlu0 %133  ;;  %v95_v51 = vpop.xlane.xlu1 %94 }
  0xc8   :  { %v149_v52 = vsel %vm144_vm1, %v116_v49, %v134_v50  ;;  %v114_v57 = vmul.f32 0.00390625, %v95_v51 }
  0xc9   :  { %1085 = vmatpush3.msra.mxu0 %v149_v52 }
  0xca   :  { %1086 = vmatprep.subr.mxu0 %v1259_v20 }
  0xcb   :  { %v131_v54 = vpop.xlane.xlu0 %130  ;;  %v92_v55 = vpop.xlane.xlu1 %91 }
  0xcc   :  { %v148_v56 = vsel %vm144_vm1, %v115_v53, %v131_v54  ;;  %v113_v61 = vmul.f32 0.00390625, %v92_v55  ;;  %v677_v55 = vld [vmem:[#allocation2 + $0xf8] sm:$0xff] }
  0xcd   :  { %1087 = vmatpush3.msra.mxu0 %v148_v56  ;;  %v676_v56 = vld [vmem:[#allocation2 + $0xf0] sm:$0xff] }
  0xce   :  { %1088 = vmatprep.subr.mxu0 %v1259_v20 }
  0xcf   :  { %v128_v58 = vpop.xlane.xlu0 %127  ;;  %v89_v59 = vpop.xlane.xlu1 %88 }
  0xd0   :  { %v147_v60 = vsel %vm144_vm1, %v114_v57, %v128_v58  ;;  %v112_v62 = vmul.f32 0.00390625, %v89_v59  ;;  %v741_v57 = vld [vmem:[#allocation6 + $0xf8] sm:$0xff]  ;;  %v675_v58 = vld [vmem:[#allocation2 + $0xe8] sm:$0xff]  ;;  %v740_v59 = vld [vmem:[#allocation6 + $0xf0] sm:$0xff] }
  0xd1   :  { %1089 = vmatpush3.msra.mxu0 %v147_v60  ;;  %v674_v60 = vld [vmem:[#allocation2 + $0xe0] sm:$0xff] }
  0xd2   :  { %1090 = vmatprep.subr.mxu0 %v1259_v20 }
  0xd3   :  { %v125_v63 = vpop.xlane.xlu0 %124  ;;  %v122_v0 = vpop.xlane.xlu1 %121 }
  0xd4   :  { %v146_v1 = vsel %vm144_vm1, %v113_v61, %v125_v63  ;;  %v145_v3 = vsel %vm144_vm1, %v112_v62, %v122_v0  ;;  %v739_v61 = vld [vmem:[#allocation6 + $0xe8] sm:$0xff]  ;;  %v673_v62 = vld [vmem:[#allocation2 + $0xd8] sm:$0xff]  ;;  %v738_v63 = vld [vmem:[#allocation6 + $0xe0] sm:$0xff] }
  0xd5   :  { %1091 = vmatpush3.msra.mxu0 %v146_v1  ;;  %v672_v0 = vld [vmem:[#allocation2 + $0xd0] sm:$0xff]  ;;  %v737_v1 = vld [vmem:[#allocation6 + $0xd8] sm:$0xff] }
  0xd6   :  { %1092 = vmatprep.subr.mxu0 %v1259_v20  ;;  %v236_v20 = vld [vmem:[%s1633_s3 + $0x8] sm:$0xff] }
  0xd7   :  { %1093 = vmatpush3.msra.mxu0 %v145_v3  ;;  %v254_v31 = vpop.permute.xlu1 %253  ;;  %v736_v3 = vld [vmem:[#allocation6 + $0xd0] sm:$0xff] }
  0xd8   :  { %1095 = vmatmul.mubr.msk.f32.vlgmr.msra.gmra.mxu0 %vm160_vm2, %v153_v2  ;;  %862 = vmatprep.subr.mxu0 %v677_v55  ;;  %v671_v2 = vld [vmem:[#allocation2 + $0xc8] sm:$0xff]  ;;  %v652_v55 = vld [vmem:[#allocation2 + $0x30] sm:$0xff] }
  0xd9   :  { %863 = vmatpush1.msra.mxu0 %v676_v56  ;;  %v716_v56 = vld [vmem:[#allocation6 + $0x30] sm:$0xff] }
  0xda   :  { %864 = vmatprep.subr.mxu0 %v675_v58  ;;  %v650_v58 = vld [vmem:[#allocation2 + $0x20] sm:$0xff] }
  0xdb   :  { %v158_v13 = vpop.permute.xlu0 %157  ;;  %v259_v32 = vpop.permute.xlu1 %258  ;;  %865 = vmatpush1.msra.mxu0 %v674_v60 }
  0xdc   :  { %866 = vmatprep.subr.mxu0 %v673_v62 }
  0xdd   :  { %867 = vmatpush1.msra.mxu0 %v672_v0 }
  0xde   :  { %868 = vmatprep.subr.mxu0 %v671_v2 }
  0xdf   :  { %v274_v33 = vpop.permute.xlu1 %273  ;;  %869 = vmatpush1.msra.mxu0 %v670_v5 }
  0xe0   :  { %870 = vmatprep.subr.mxu0 %v669_v7 }
  0xe1   :  { %871 = vmatpush1.msra.mxu0 %v668_v9 }
  0xe2   :  { %872 = vmatprep.subr.mxu0 %v667_v11 }
  0xe3   :  { %v279_v34 = vpop.permute.xlu1 %278 }
  0xe7   :  { %v264_v35 = vpop.permute.xlu1 %263 }
  0xeb   :  { %v284_v41 = vpop.permute.xlu1 %283 }
  0xef   :  { %v269_v48 = vpop.permute.xlu1 %268 }
  0xf3   :  { %v289_v53 = vpop.permute.xlu1 %288 }
 0x198   :  { %v230_v14 = vpop.f32.mrf.mxu0 }
 0x199   :  { %v231_v15 = vadd.f32 %v230_v14, %v158_v13  ;;  %v666_v13 = vld [vmem:[#allocation2 + $0xa0] sm:$0xff] }
 0x19a   :  { %v1096_v16 = vpop.f32.mrf.mxu0  ;;  %v730_v14 = vld [vmem:[#allocation6 + $0xa0] sm:$0xff]  ;;  %873 = vmatpush1.msra.mxu0 %v666_v13 }
 0x19b   :  { %v234_v17 = vmax.f32 %v231_v15, 0.0  ;;  %v665_v15 = vld [vmem:[#allocation2 + $0x98] sm:$0xff] }
 0x19c   :  { %v729_v16 = vld [vmem:[#allocation6 + $0x98] sm:$0xff]  ;;  %874 = vmatprep.subr.mxu0 %v665_v15 }
 0x19d   :  { %1097 = vmatprep.subr.msk.mxu1 %vm316_vm4, %v234_v17 }
 0x19e   :  { %1098 = vmatpush3.msk.msra.mxu1 %vm316_vm4, %v234_v17  ;;  %v664_v17 = vld [vmem:[#allocation2 + $0x90] sm:$0xff] }
 0x19f   :  { %1100 = vmatmul.mubr.msk.f32.vlgmr.msra.gmra.mxu1 %vm291_vm3, %v236_v20  ;;  %783 = vmatprep.subr.mxu1 %v741_v57  ;;  %v728_v20 = vld [vmem:[#allocation6 + $0x90] sm:$0xff]  ;;  %v651_v57 = vld [vmem:[#allocation2 + $0x28] sm:$0xff] }
 0x1a0   :  { %1102 = vmatprep.mubr.msk.f32.mxu1 %vm291_vm3, %v237_v21  ;;  %784 = vmatpush1.msra.mxu1 %v740_v59  ;;  %v663_v21 = vld [vmem:[#allocation2 + $0x88] sm:$0xff] }
 0x1a1   :  { %785 = vmatprep.subr.mxu1 %v739_v61  ;;  %875 = vmatpush1.msra.mxu0 %v664_v17 }
 0x1a2   :  { %786 = vmatpush1.msra.mxu1 %v738_v63  ;;  %876 = vmatprep.subr.mxu0 %v663_v21 }
 0x1a3   :  { %1103 = vmatmul.mubr.msk.f32.gmra.mxu1 %vm291_vm3, %v238_v22  ;;  %787 = vmatprep.subr.mxu1 %v737_v1  ;;  %v727_v22 = vld [vmem:[#allocation6 + $0x88] sm:$0xff] }
 0x1a4   :  { %1105 = vmatprep.mubr.msk.f32.mxu1 %vm291_vm3, %v239_v25  ;;  %788 = vmatpush1.msra.mxu1 %v736_v3  ;;  %v662_v25 = vld [vmem:[#allocation2 + $0x80] sm:$0xff] }
 0x1a5   :  { %789 = vmatprep.subr.mxu1 %v735_v4  ;;  %877 = vmatpush1.msra.mxu0 %v662_v25 }
 0x1a6   :  { %790 = vmatpush1.msra.mxu1 %v734_v6 }
 0x1a7   :  { %1106 = vmatmul.mubr.msk.f32.gmra.mxu1 %vm291_vm3, %v240_v26  ;;  %791 = vmatprep.subr.mxu1 %v733_v8  ;;  %v726_v26 = vld [vmem:[#allocation6 + $0x80] sm:$0xff] }
 0x1a8   :  { %1108 = vmatprep.mubr.msk.f32.mxu1 %vm291_vm3, %v241_v29  ;;  %792 = vmatpush1.msra.mxu1 %v732_v10  ;;  %v661_v29 = vld [vmem:[#allocation2 + $0x78] sm:$0xff] }
 0x1a9   :  { %793 = vmatprep.subr.mxu1 %v731_v12  ;;  %878 = vmatprep.subr.mxu0 %v661_v29 }
 0x1aa   :  { %794 = vmatpush1.msra.mxu1 %v730_v14 }
 0x1ab   :  { %1109 = vmatmul.mubr.msk.f32.gmra.mxu1 %vm291_vm3, %v242_v30  ;;  %795 = vmatprep.subr.mxu1 %v729_v16  ;;  %v725_v30 = vld [vmem:[#allocation6 + $0x78] sm:$0xff] }
 0x1ac   :  { %796 = vmatpush1.msra.mxu1 %v728_v20 }
 0x1ad   :  { %797 = vmatprep.subr.mxu1 %v727_v22 }
 0x1ae   :  { %798 = vmatpush1.msra.mxu1 %v726_v26 }
 0x1af   :  { %799 = vmatprep.subr.mxu1 %v725_v30 }
 0x25f   :  { %v1101_v36 = vpop.f32.mrf.mxu1 }
 0x260   :  { %v1476_v37 = vadd.f32 %v1101_v36, %v259_v32  ;;  %v724_v32 = vld [vmem:[#allocation6 + $0x70] sm:$0xff]  ;;  %v722_v36 = vld [vmem:[#allocation6 + $0x60] sm:$0xff] }
 0x261   :  { %v386_v38 = vpop.f32.mrf.mxu1  ;;  %800 = vmatpush1.msra.mxu1 %v724_v32 }
 0x262   :  { %v1478_v39 = vadd.f32 %v386_v38, %v254_v31  ;;  %435 = vrot.lane.b32.xlu1 %v1476_v37, %s1262_s16  ;;  %v660_v31 = vld [vmem:[#allocation2 + $0x70] sm:$0xff]  ;;  %v657_v38 = vld [vmem:[#allocation2 + $0x58] sm:$0xff] }
 0x263   :  { %v1104_v40 = vpop.f32.mrf.mxu1  ;;  %879 = vmatpush1.msra.mxu0 %v660_v31 }
 0x264   :  { %433 = vrot.lane.b32.xlu0 %v1478_v39, %s1262_s16  ;;  %v1491_v51 = vadd.f32 %v1104_v40, %v269_v48  ;;  %v721_v40 = vld [vmem:[#allocation6 + $0x58] sm:$0xff]  ;;  %v654_v48 = vld [vmem:[#allocation2 + $0x40] sm:$0xff] }
 0x265   :  { %v396_v42 = vpop.f32.mrf.mxu1 }
 0x266   :  { %v1482_v43 = vadd.f32 %v396_v42, %v264_v35  ;;  %v658_v35 = vld [vmem:[#allocation2 + $0x60] sm:$0xff]  ;;  %v720_v42 = vld [vmem:[#allocation6 + $0x50] sm:$0xff] }
 0x267   :  { %v1107_v44 = vpop.f32.mrf.mxu1 }
 0x268   :  { %v1484_v45 = vadd.f32 %v1107_v44, %v279_v34  ;;  %437 = vrot.lane.b32.xlu0 %v1482_v43, %s1262_s16  ;;  %v723_v34 = vld [vmem:[#allocation6 + $0x68] sm:$0xff] }
 0x269   :  { %v406_v46 = vpop.f32.mrf.mxu1  ;;  %801 = vmatprep.subr.mxu1 %v723_v34  ;;  %v655_v44 = vld [vmem:[#allocation2 + $0x48] sm:$0xff] }
 0x26a   :  { %v1487_v47 = vadd.f32 %v406_v46, %v274_v33  ;;  %443 = vrot.lane.b32.xlu1 %v1484_v45, %s1262_s16  ;;  %v659_v33 = vld [vmem:[#allocation2 + $0x68] sm:$0xff]  ;;  %802 = vmatpush1.msra.mxu1 %v722_v36  ;;  %v649_v36 = vld [vmem:[#allocation2 + $0x18] sm:$0xff] }
 0x26b   :  { %v1110_v49 = vpop.f32.mrf.mxu1  ;;  %880 = vmatprep.subr.mxu0 %v659_v33  ;;  %v719_v46 = vld [vmem:[#allocation6 + $0x48] sm:$0xff]  ;;  %803 = vmatprep.subr.mxu1 %v721_v40 }
 0x26c   :  { %441 = vrot.lane.b32.xlu0 %v1487_v47, %s1262_s16  ;;  %v1497_v54 = vadd.f32 %v1110_v49, %v289_v53  ;;  %881 = vmatpush1.msra.mxu0 %v658_v35  ;;  %v718_v49 = vld [vmem:[#allocation6 + $0x40] sm:$0xff]  ;;  %v717_v53 = vld [vmem:[#allocation6 + $0x38] sm:$0xff] }
 0x26d   :  { %v416_v50 = vpop.f32.mrf.mxu1  ;;  %882 = vmatprep.subr.mxu0 %v657_v38  ;;  %804 = vmatpush1.msra.mxu1 %v720_v42  ;;  %v714_v38 = vld [vmem:[#allocation6 + $0x20] sm:$0xff] }
 0x26e   :  { %v1493_v52 = vadd.f32 %v416_v50, %v284_v41  ;;  %v656_v41 = vld [vmem:[#allocation2 + $0x50] sm:$0xff]  ;;  %v653_v50 = vld [vmem:[#allocation2 + $0x38] sm:$0xff]  ;;  %805 = vmatprep.subr.mxu1 %v719_v46 }
 0x26f   :  { %883 = vmatpush1.msra.mxu0 %v656_v41  ;;  %806 = vmatpush1.msra.mxu1 %v718_v49  ;;  %v648_v41 = vld [vmem:[#allocation2 + $0x10] sm:$0xff]  ;;  %v713_v46 = vld [vmem:[#allocation6 + $0x18] sm:$0xff] }
 0x270   :  { %445 = vrot.lane.b32.xlu1 %v1493_v52, %s1262_s16  ;;  %439 = vrot.lane.b32.xlu0 %v1491_v51, %s1262_s16 }
 0x271   :  { %884 = vmatprep.subr.mxu0 %v655_v44  ;;  %807 = vmatprep.subr.mxu1 %v717_v53  ;;  %v712_v53 = vld [vmem:[#allocation6 + $0x10] sm:$0xff] }
 0x272   :  { %885 = vmatpush1.msra.mxu0 %v654_v48  ;;  %808 = vmatpush1.msra.mxu1 %v716_v56  ;;  %v647_v48 = vld [vmem:[#allocation2 + $0x8] sm:$0xff] }
 0x273   :  { %886 = vmatprep.subr.mxu0 %v653_v50  ;;  %v711_v56 = vld [vmem:[#allocation6 + $0x8] sm:$0xff] }
 0x274   :  { %447 = vrot.lane.b32.xlu1 %v1497_v54, %s1262_s16  ;;  %887 = vmatpush1.msra.mxu0 %v652_v55  ;;  %v646_v55 = vld [vmem:[#allocation2] sm:$0xff] }
 0x275   :  { %888 = vmatprep.subr.mxu0 %v651_v57  ;;  %v709_v57 = vld [vmem:[#allocation2 + $0x1f8] sm:$0xff] }
 0x276   :  { %889 = vmatpush1.msra.mxu0 %v650_v58  ;;  %v710_v58 = vld [vmem:[#allocation6] sm:$0xff] }
 0x277   :  { %890 = vmatprep.subr.mxu0 %v649_v36  ;;  %v691_v36 = vld [vmem:[#allocation2 + $0x168] sm:$0xff] }
 0x278   :  { %891 = vmatpush1.msra.mxu0 %v648_v41  ;;  %v755_v41 = vld [vmem:[#allocation6 + $0x168] sm:$0xff] }
 0x279   :  { %892 = vmatprep.subr.mxu0 %v647_v48  ;;  %v753_v48 = vld [vmem:[#allocation6 + $0x158] sm:$0xff] }
 0x27a   :  { %893 = vmatpush1.msra.mxu0 %v646_v55  ;;  %v751_v55 = vld [vmem:[#allocation6 + $0x148] sm:$0xff] }
 0x27b   :  { %894 = vmatprep.subr.mxu0 %v709_v57  ;;  %v750_v57 = vld [vmem:[#allocation6 + $0x140] sm:$0xff] }
 0x2d4   :  { %v436_v59 = vpop.permute.xlu1 %435 }
 0x2d5   :  { %v458_v60 = vadd.f32 %v436_v59, %v1476_v37 }
 0x2d6   :  { %v434_v61 = vpop.permute.xlu0 %433 }
 0x2d7   :  { %v466_v62 = vsub.f32 0.0, %v458_v60  ;;  %v457_v63 = vadd.f32 %v434_v61, %v1478_v39  ;;  %v708_v60 = vld [vmem:[#allocation2 + $0x1f0] sm:$0xff] }
 0x2d8   :  { %895 = vmatpush2.msra.mxu0 %v708_v60  ;;  %v683_v60 = vld [vmem:[#allocation2 + $0x128] sm:$0xff] }
 0x2d9   :  { %v475_v0 = vmul.f32 1.442695, %v466_v62  ;;  %v465_v1 = vsub.f32 0.0, %v457_v63  ;;  %v773_v62 = vld [vmem:[#allocation6 + $0x1f8] sm:$0xff]  ;;  %v707_v63 = vld [vmem:[#allocation2 + $0x1e8] sm:$0xff] }
 0x2da   :  { %v438_v2 = vpop.permute.xlu0 %437  ;;  %896 = vmatprep.subr.mxu0 %v707_v63  ;;  %v747_v63 = vld [vmem:[#allocation6 + $0x128] sm:$0xff] }
 0x2db   :  { %1124 = vpow2.f32 %v475_v0  ;;  %v473_v3 = vmul.f32 1.442695, %v465_v1  ;;  %v459_v4 = vadd.f32 %v438_v2, %v1482_v43  ;;  %v772_v1 = vld [vmem:[#allocation6 + $0x1f0] sm:$0xff]  ;;  %v706_v2 = vld [vmem:[#allocation2 + $0x1e0] sm:$0xff] }
 0x2dc   :  { %v444_v5 = vpop.permute.xlu1 %443  ;;  %897 = vmatpush2.msra.mxu0 %v706_v2  ;;  %v680_v2 = vld [vmem:[#allocation2 + $0x110] sm:$0xff] }
 0x2dd   :  { %1126 = vpow2.f32 %v473_v3  ;;  %v467_v6 = vsub.f32 0.0, %v459_v4  ;;  %v462_v7 = vadd.f32 %v444_v5, %v1484_v45  ;;  %v771_v3 = vld [vmem:[#allocation6 + $0x1e8] sm:$0xff]  ;;  %v705_v4 = vld [vmem:[#allocation2 + $0x1d8] sm:$0xff] }
 0x2de   :  { %v442_v8 = vpop.permute.xlu0 %441  ;;  %898 = vmatprep.subr.mxu0 %v705_v4  ;;  %v679_v4 = vld [vmem:[#allocation2 + $0x108] sm:$0xff] }
 0x2df   :  { %v477_v9 = vmul.f32 1.442695, %v467_v6  ;;  %v470_v10 = vsub.f32 0.0, %v462_v7  ;;  %v461_v37 = vadd.f32 %v442_v8, %v1487_v47  ;;  %v770_v6 = vld [vmem:[#allocation6 + $0x1e0] sm:$0xff]  ;;  %v704_v7 = vld [vmem:[#allocation2 + $0x1d0] sm:$0xff]  ;;  %v769_v8 = vld [vmem:[#allocation6 + $0x1d8] sm:$0xff] }
 0x2e0   :  { %899 = vmatpush2.msra.mxu0 %v704_v7  ;;  %v743_v7 = vld [vmem:[#allocation6 + $0x108] sm:$0xff] }
 0x2e1   :  { %1128 = vpow2.f32 %v477_v9  ;;  %v483_v11 = vmul.f32 1.442695, %v470_v10  ;;  %v469_v39 = vsub.f32 0.0, %v461_v37  ;;  %v703_v9 = vld [vmem:[#allocation2 + $0x1c8] sm:$0xff]  ;;  %v768_v37 = vld [vmem:[#allocation6 + $0x1d0] sm:$0xff] }
 0x2e2   :  { %v440_v12 = vpop.permute.xlu0 %439  ;;  %v446_v13 = vpop.permute.xlu1 %445  ;;  %900 = vmatprep.subr.mxu0 %v703_v9 }
 0x2e3   :  { %1130 = vpow2.f32 %v483_v11  ;;  %v481_v14 = vmul.f32 1.442695, %v469_v39  ;;  %v460_v15 = vadd.f32 %v440_v12, %v1491_v51  ;;  %v463_v43 = vadd.f32 %v446_v13, %v1493_v52  ;;  %v702_v11 = vld [vmem:[#allocation2 + $0x1c0] sm:$0xff]  ;;  %v767_v39 = vld [vmem:[#allocation6 + $0x1c8] sm:$0xff]  ;;  %v701_v13 = vld [vmem:[#allocation2 + $0x1b8] sm:$0xff] }
 0x2e4   :  { %901 = vmatpush2.msra.mxu0 %v702_v11 }
 0x2e5   :  { %1132 = vpow2.f32 %v481_v14  ;;  %v468_v16 = vsub.f32 0.0, %v460_v15  ;;  %v471_v17 = vsub.f32 0.0, %v463_v43  ;;  %v766_v14 = vld [vmem:[#allocation6 + $0x1c0] sm:$0xff]  ;;  %v700_v15 = vld [vmem:[#allocation2 + $0x1b0] sm:$0xff]  ;;  %v765_v43 = vld [vmem:[#allocation6 + $0x1b8] sm:$0xff]  ;;  %902 = vmatprep.subr.mxu0 %v701_v13 }
 0x2e6   :  { %v448_v45 = vpop.permute.xlu1 %447  ;;  %903 = vmatpush2.msra.mxu0 %v700_v15 }
 0x2e7   :  { %v479_v20 = vmul.f32 1.442695, %v468_v16  ;;  %v485_v21 = vmul.f32 1.442695, %v471_v17  ;;  %v464_v22 = vadd.f32 %v448_v45, %v1497_v54  ;;  %v715_v54 = vld [vmem:[#allocation6 + $0x28] sm:$0xff]  ;;  %v764_v17 = vld [vmem:[#allocation6 + $0x1b0] sm:$0xff] }
 0x2e8   :  { %v1125_v47 = vpop.eup %1124  ;;  %809 = vmatprep.subr.mxu1 %v715_v54  ;;  %v699_v16 = vld [vmem:[#allocation2 + $0x1a8] sm:$0xff]  ;;  %v757_v54 = vld [vmem:[#allocation6 + $0x178] sm:$0xff] }
 0x2e9   :  { %v490_v25 = vadd.f32 1.0, %v1125_v47  ;;  %1134 = vpow2.f32 %v479_v20  ;;  %v472_v26 = vsub.f32 0.0, %v464_v22  ;;  %810 = vmatpush1.msra.mxu1 %v714_v38  ;;  %v698_v20 = vld [vmem:[#allocation2 + $0x1a0] sm:$0xff]  ;;  %904 = vmatprep.subr.mxu0 %v699_v16  ;;  %v697_v47 = vld [vmem:[#allocation2 + $0x198] sm:$0xff]  ;;  %v756_v38 = vld [vmem:[#allocation6 + $0x170] sm:$0xff] }
 0x2ea   :  { %v1127_v29 = vpop.eup %1126  ;;  %1136 = vpow2.f32 %v485_v21  ;;  %811 = vmatprep.subr.mxu1 %v713_v46  ;;  %v763_v21 = vld [vmem:[#allocation6 + $0x1a8] sm:$0xff]  ;;  %905 = vmatpush2.msra.mxu0 %v698_v20  ;;  %v688_v46 = vld [vmem:[#allocation2 + $0x150] sm:$0xff] }
 0x2eb   :  { %1138 = vrcp.f32 %v490_v25  ;;  %v489_v30 = vadd.f32 1.0, %v1127_v29  ;;  %v487_v31 = vmul.f32 1.442695, %v472_v26  ;;  %812 = vmatpush1.msra.mxu1 %v712_v53  ;;  %v762_v25 = vld [vmem:[#allocation6 + $0x1a0] sm:$0xff]  ;;  %v696_v26 = vld [vmem:[#allocation2 + $0x190] sm:$0xff]  ;;  %v761_v29 = vld [vmem:[#allocation6 + $0x198] sm:$0xff]  ;;  %906 = vmatprep.subr.mxu0 %v697_v47 }
 0x2ec   :  { %813 = vmatprep.subr.mxu1 %v711_v56  ;;  %907 = vmatpush2.msra.mxu0 %v696_v26  ;;  %v686_v53 = vld [vmem:[#allocation2 + $0x140] sm:$0xff]  ;;  %v685_v56 = vld [vmem:[#allocation2 + $0x138] sm:$0xff] }
 0x2ed   :  { %1140 = vrcp.f32 %v489_v30  ;;  %814 = vmatpush1.msra.mxu1 %v710_v58  ;;  %v695_v30 = vld [vmem:[#allocation2 + $0x188] sm:$0xff]  ;;  %v684_v58 = vld [vmem:[#allocation2 + $0x130] sm:$0xff] }
 0x2ee   :  { %v1129_v51 = vpop.eup %1128  ;;  %1142 = vpow2.f32 %v487_v31  ;;  %815 = vmatprep.subr.mxu1 %v773_v62  ;;  %v760_v31 = vld [vmem:[#allocation6 + $0x190] sm:$0xff]  ;;  %908 = vmatprep.subr.mxu0 %v695_v30  ;;  %v682_v62 = vld [vmem:[#allocation2 + $0x120] sm:$0xff] }
 0x2ef   :  { %v491_v52 = vadd.f32 1.0, %v1129_v51  ;;  %816 = vmatpush2.msra.mxu1 %v772_v1  ;;  %v694_v51 = vld [vmem:[#allocation2 + $0x180] sm:$0xff] }
 0x2f0   :  { %v1131_v32 = vpop.eup %1130  ;;  %817 = vmatprep.subr.mxu1 %v771_v3  ;;  %909 = vmatpush2.msra.mxu0 %v694_v51  ;;  %v746_v1 = vld [vmem:[#allocation6 + $0x120] sm:$0xff]  ;;  %v745_v3 = vld [vmem:[#allocation6 + $0x118] sm:$0xff]  ;;  %v1168_v51 = vld [vmem:[%s1630_s0 + $0x30] sm:$0xff] }
 0x2f1   :  { %1144 = vrcp.f32 %v491_v52  ;;  %v494_v33 = vadd.f32 1.0, %v1131_v32  ;;  %818 = vmatpush2.msra.mxu1 %v770_v6  ;;  %v759_v32 = vld [vmem:[#allocation6 + $0x188] sm:$0xff]  ;;  %v678_v6 = vld [vmem:[#allocation2 + $0x100] sm:$0xff] }
 0x2f2   :  { %v1133_v34 = vpop.eup %1132  ;;  %819 = vmatprep.subr.mxu1 %v769_v8  ;;  %v742_v8 = vld [vmem:[#allocation6 + $0x100] sm:$0xff] }
 0x2f3   :  { %1146 = vrcp.f32 %v494_v33  ;;  %v493_v35 = vadd.f32 1.0, %v1133_v34  ;;  %820 = vmatpush2.msra.mxu1 %v768_v37  ;;  %v693_v33 = vld [vmem:[#allocation2 + $0x178] sm:$0xff]  ;;  %v758_v34 = vld [vmem:[#allocation6 + $0x180] sm:$0xff] }
 0x2f4   :  { %821 = vmatprep.subr.mxu1 %v767_v39  ;;  %910 = vmatprep.subr.mxu0 %v693_v33 }
 0x2f5   :  { %1148 = vrcp.f32 %v493_v35  ;;  %822 = vmatpush2.msra.mxu1 %v766_v14  ;;  %v692_v35 = vld [vmem:[#allocation2 + $0x170] sm:$0xff] }
 0x2f6   :  { %v1135_v40 = vpop.eup %1134  ;;  %823 = vmatprep.subr.mxu1 %v765_v43  ;;  %911 = vmatpush2.msra.mxu0 %v692_v35 }
 0x2f7   :  { %v1137_v42 = vpop.eup %1136  ;;  %v492_v44 = vadd.f32 1.0, %v1135_v40  ;;  %824 = vmatpush2.msra.mxu1 %v764_v17  ;;  %v690_v40 = vld [vmem:[#allocation2 + $0x160] sm:$0xff]  ;;  %912 = vmatprep.subr.mxu0 %v691_v36 }
 0x2f8   :  { %v1139_v49 = vpop.eup %1138  ;;  %v495_v50 = vadd.f32 1.0, %v1137_v42  ;;  %825 = vmatprep.subr.mxu1 %v763_v21  ;;  %v689_v42 = vld [vmem:[#allocation2 + $0x158] sm:$0xff]  ;;  %913 = vmatpush2.msra.mxu0 %v690_v40  ;;  %v1170_v36 = vld [vmem:[%s1630_s0 + $0x60] sm:$0xff]  ;;  %v1171_v40 = vld [vmem:[%s1630_s0 + $0x68] sm:$0xff] }
 0x2f9   :  { %1150 = vrcp.f32 %v492_v44  ;;  %520 = vperm.xlu1 %1123, %v1139_v49   ;;  %826 = vmatpush2.msra.mxu1 %v762_v25  ;;  %v754_v44 = vld [vmem:[#allocation6 + $0x160] sm:$0xff]  ;;  %v687_v49 = vld [vmem:[#allocation2 + $0x148] sm:$0xff]  ;;  %v1167_v25 = vld [vmem:[%s1630_s0 + $0x58] sm:$0xff] }
 0x2fa   :  { %v1141_v59 = vpop.eup %1140  ;;  %1152 = vrcp.f32 %v495_v50  ;;  %827 = vmatprep.subr.mxu1 %v761_v29  ;;  %914 = vmatprep.subr.mxu0 %v689_v42  ;;  %v752_v50 = vld [vmem:[#allocation6 + $0x150] sm:$0xff] }
 0x2fb   :  { %v1143_v61 = vpop.eup %1142  ;;  %515 = vperm.xlu0 %1122, %v1141_v59   ;;  %828 = vmatpush2.msra.mxu1 %v760_v31  ;;  %v749_v59 = vld [vmem:[#allocation6 + $0x138] sm:$0xff] }
 0x2fc   :  { %v496_v0 = vadd.f32 1.0, %v1143_v61  ;;  %829 = vmatprep.subr.mxu1 %v759_v32  ;;  %915 = vmatpush2.msra.mxu0 %v688_v46  ;;  %v748_v61 = vld [vmem:[#allocation6 + $0x130] sm:$0xff]  ;;  %v1169_v32 = vld [vmem:[%s1630_s0 + $0x38] sm:$0xff] }
 0x2fd   :  { %830 = vmatpush2.msra.mxu1 %v758_v34  ;;  %916 = vmatprep.subr.mxu0 %v687_v49 }
 0x2fe   :  { %v1145_v5 = vpop.eup %1144  ;;  %1154 = vrcp.f32 %v496_v0  ;;  %831 = vmatprep.subr.mxu1 %v757_v54  ;;  %917 = vmatpush2.msra.mxu0 %v686_v53  ;;  %v681_v0 = vld [vmem:[#allocation2 + $0x118] sm:$0xff] }
 0x2ff   :  { %525 = vperm.xlu0 %1122, %v1145_v5   ;;  %832 = vmatpush2.msra.mxu1 %v756_v38  ;;  %v744_v5 = vld [vmem:[#allocation6 + $0x110] sm:$0xff] }
 0x300   :  { %v1147_v10 = vpop.eup %1146  ;;  %833 = vmatprep.subr.mxu1 %v755_v41  ;;  %918 = vmatprep.subr.mxu0 %v685_v56 }
 0x301   :  { %540 = vperm.xlu1 %1123, %v1147_v10   ;;  %834 = vmatpush2.msra.mxu1 %v754_v44 }
 0x302   :  { %v1149_v12 = vpop.eup %1148  ;;  %835 = vmatprep.subr.mxu1 %v753_v48  ;;  %919 = vmatpush2.msra.mxu0 %v684_v58 }
 0x303   :  { %535 = vperm.xlu0 %1122, %v1149_v12   ;;  %836 = vmatpush2.msra.mxu1 %v752_v50 }
 0x304   :  { %837 = vmatprep.subr.mxu1 %v751_v55  ;;  %920 = vmatprep.subr.mxu0 %v683_v60 }
 0x305   :  { %838 = vmatpush2.msra.mxu1 %v750_v57  ;;  %921 = vmatpush2.msra.mxu0 %v682_v62 }
 0x306   :  { %v1151_v45 = vpop.eup %1150  ;;  %839 = vmatprep.subr.mxu1 %v749_v59  ;;  %922 = vmatprep.subr.mxu0 %v681_v0 }
 0x307   :  { %v1153_v22 = vpop.eup %1152  ;;  %530 = vperm.xlu0 %1122, %v1151_v45   ;;  %840 = vmatpush2.msra.mxu1 %v748_v61 }
 0x308   :  { %545 = vperm.xlu1 %1123, %v1153_v22   ;;  %841 = vmatprep.subr.mxu1 %v747_v63  ;;  %v1166_v22 = vld [vmem:[%s1630_s0 + $0x50] sm:$0xff] }
 0x309   :  { %842 = vmatpush2.msra.mxu1 %v746_v1  ;;  %923 = vmatpush2.msra.mxu0 %v680_v2  ;;  %v1172_v63 = vld [vmem:[%s1630_s0 + $0x70] sm:$0xff]  ;;  %v1173_v1 = vld [vmem:[%s1630_s0 + $0x78] sm:$0xff] }
 0x30a   :  { %843 = vmatprep.subr.mxu1 %v745_v3  ;;  %924 = vmatprep.subr.mxu0 %v679_v4 }
 0x30b   :  { %v1155_v52 = vpop.eup %1154  ;;  %844 = vmatpush2.msra.mxu1 %v744_v5  ;;  %925 = vmatpush2.msra.mxu0 %v678_v6 }
 0x30c   :  { %550 = vperm.xlu1 %1123, %v1155_v52   ;;  %845 = vmatprep.subr.mxu1 %v743_v7 }
 0x30d   :  { %846 = vmatpush2.msra.mxu1 %v742_v8 }
 0x374   :  { %v521_v37 = vpop.permute.xlu1 %520 }
 0x375   :  { %v1515_v12 = vmul.f32 %v521_v37, %v1371_v23  ;;  %v1518_v13 = vmul.f32 %v521_v37, %v1376_v24  ;;  %v1164_v23 = vld [vmem:[%s1630_s0 + $0x40] sm:$0xff] }
 0x376   :  { %v516_v9 = vpop.permute.xlu0 %515 }
 0x377   :  { %v1509_v11 = vmul.f32 %v516_v9, %v1383_v27  ;;  %v1512_v39 = vmul.f32 %v516_v9, %v1388_v28 }
 0x379   :  { %v569_v27 = vmax.f32 %v1509_v11, %v1515_v12  ;;  %v578_v28 = vmax.f32 %v1512_v39, %v1518_v13  ;;  %v605_v17 = vadd.f32 %v1515_v12, %v1509_v11  ;;  %v614_v45 = vadd.f32 %v1518_v13, %v1512_v39 }
 0x37a   :  { %v526_v10 = vpop.permute.xlu0 %525 }
 0x37b   :  { %v1521_v14 = vmul.f32 %v526_v10, %v1358_v18  ;;  %v1524_v15 = vmul.f32 %v526_v10, %v1363_v19  ;;  %v1165_v18 = vld [vmem:[%s1630_s0 + $0x48] sm:$0xff]  ;;  %s933_s0 = sld [smem:[#allocation8]] }
 0x37c   :  { %v541_v16 = vpop.permute.xlu1 %540 }
 0x37d   :  { %v570_v20 = vmax.f32 %v569_v27, %v1521_v14  ;;  %v579_v21 = vmax.f32 %v578_v28, %v1524_v15  ;;  %v1549_v47 = vmul.f32 %v1166_v22, %v541_v16  ;;  %v1554_v26 = vmul.f32 %v1167_v25, %v541_v16 }
 0x37e   :  { %v536_v43 = vpop.permute.xlu0 %535  ;;  %v606_v30 = vadd.f32 %v605_v17, %v1521_v14  ;;  %v615_v31 = vadd.f32 %v614_v45, %v1524_v15 }
 0x37f   :  { %v1533_v24 = vmul.f32 %v1164_v23, %v536_v43  ;;  %v1538_v19 = vmul.f32 %v1165_v18, %v536_v43 }
 0x381   :  { %v587_v35 = vmax.f32 %v1533_v24, %v1549_v47  ;;  %v596_v54 = vmax.f32 %v1538_v19, %v1554_v26  ;;  %v623_v49 = vadd.f32 %v1549_v47, %v1533_v24  ;;  %v632_v50 = vadd.f32 %v1554_v26, %v1538_v19 }
 0x382   :  { %v531_v29 = vpop.permute.xlu0 %530 }
 0x383   :  { %v1561_v52 = vmul.f32 %v1168_v51, %v531_v29  ;;  %v1566_v33 = vmul.f32 %v1169_v32, %v531_v29  ;;  %v546_v34 = vpop.permute.xlu1 %545 }
 0x384   :  { %v1575_v38 = vmul.f32 %v1170_v36, %v546_v34  ;;  %v1580_v41 = vmul.f32 %v1171_v40, %v546_v34 }
 0x385   :  { %v571_v42 = vmax.f32 %v570_v20, %v1561_v52  ;;  %v580_v44 = vmax.f32 %v579_v21, %v1566_v33  ;;  %v607_v46 = vadd.f32 %v606_v30, %v1561_v52  ;;  %v616_v48 = vadd.f32 %v615_v31, %v1566_v33 }
 0x386   :  { %v588_v53 = vmax.f32 %v587_v35, %v1575_v38  ;;  %v597_v55 = vmax.f32 %v596_v54, %v1580_v41  ;;  %v624_v61 = vadd.f32 %v623_v49, %v1575_v38  ;;  %v633_v62 = vadd.f32 %v632_v50, %v1580_v41 }
 0x387   :  { %v572_v56 = vrot.slane %v571_v42, 4  ;;  %v581_v57 = vrot.slane %v580_v44, 4  ;;  %v608_v58 = vrot.slane %v607_v46, 4  ;;  %v617_v59 = vrot.slane %v616_v48, 4  ;;  %v551_v60 = vpop.permute.xlu1 %550 }
 0x388   :  { %v1597_v0 = vmul.f32 %v1172_v63, %v551_v60  ;;  %v1602_v2 = vmul.f32 %v1173_v1, %v551_v60 }
 0x389   :  { %v573_v3 = vmax.f32 %v571_v42, %v572_v56  ;;  %v582_v4 = vmax.f32 %v580_v44, %v581_v57  ;;  %v609_v5 = vadd.f32 %v608_v58, %v607_v46  ;;  %v618_v6 = vadd.f32 %v617_v59, %v616_v48 }
 0x38a   :  { %v589_v7 = vmax.f32 %v588_v53, %v1597_v0  ;;  %v598_v8 = vmax.f32 %v597_v55, %v1602_v2  ;;  %v625_v9 = vadd.f32 %v624_v61, %v1597_v0  ;;  %v634_v10 = vadd.f32 %v633_v62, %v1602_v2 }
 0x38b   :  { %v574_v37 = vrot.slane %v573_v3, 2  ;;  %v583_v43 = vrot.slane %v582_v4, 2  ;;  %v610_v16 = vrot.slane %v609_v5, 2  ;;  %v619_v27 = vrot.slane %v618_v6, 2 }
 0x38c   :  { %v590_v28 = vrot.slane %v589_v7, 4  ;;  %v599_v23 = vrot.slane %v598_v8, 4  ;;  %v626_v18 = vrot.slane %v625_v9, 4  ;;  %v635_v17 = vrot.slane %v634_v10, 4 }
 0x38d   :  { %v575_v45 = vmax.f32 %v573_v3, %v574_v37  ;;  %v611_v20 = vadd.f32 %v610_v16, %v609_v5  ;;  %v584_v21 = vmax.f32 %v582_v4, %v583_v43  ;;  %v620_v22 = vadd.f32 %v619_v27, %v618_v6 }
 0x38e   :  { %v591_v25 = vmax.f32 %v589_v7, %v590_v28  ;;  %v600_v29 = vmax.f32 %v598_v8, %v599_v23  ;;  %v627_v30 = vadd.f32 %v626_v18, %v625_v9  ;;  %v636_v31 = vadd.f32 %v635_v17, %v634_v10 }
 0x38f   :  { %v612_v51 = vrot.slane %v611_v20, 1  ;;  %v621_v32 = vrot.slane %v620_v22, 1  ;;  %v585_v40 = vrot.slane %v584_v21, 1  ;;  %v576_v42 = vrot.slane %v575_v45, 1 }
 0x390   :  { %v592_v34 = vrot.slane %v591_v25, 2  ;;  %v601_v35 = vrot.slane %v600_v29, 2  ;;  %v628_v54 = vrot.slane %v627_v30, 2  ;;  %v637_v36 = vrot.slane %v636_v31, 2 }
 0x391   :  { %v622_v50 = vadd.f32 %v621_v32, %v620_v22  ;;  %v613_v53 = vadd.f32 %v612_v51, %v611_v20  ;;  %v586_v59 = vmax.f32 %v584_v21, %v585_v40  ;;  %v577_v60 = vmax.f32 %v575_v45, %v576_v42 }
 0x392   :  { %v593_v44 = vmax.f32 %v591_v25, %v592_v34  ;;  %v629_v46 = vadd.f32 %v628_v54, %v627_v30  ;;  %v602_v48 = vmax.f32 %v600_v29, %v601_v35  ;;  %v638_v49 = vadd.f32 %v637_v36, %v636_v31 }
 0x393   :  { %v643_v3 = vmul.f32 0.03125, %v622_v50  ;;  %v642_v4 = vmul.f32 0.03125, %v613_v53  ;;  %v934_v16 = vstv %s933_s0  ;;  %v938_v28 = vstv %s1059_s11 }
 0x394   :  { %v630_v55 = vrot.slane %v629_v46, 1  ;;  %v603_v56 = vrot.slane %v602_v48, 1  ;;  %v594_v57 = vrot.slane %v593_v44, 1  ;;  %v639_v58 = vrot.slane %v638_v49, 1 }
 0x395   :  { %v1263_v54 = vmov 1966171168   ;;  %v959_v40 = vlaneseq }
 0x396   :  { %v604_v61 = vmax.f32 %v602_v48, %v603_v56  ;;  %v595_v62 = vmax.f32 %v593_v44, %v594_v57  ;;  %v640_v63 = vadd.f32 %v639_v58, %v638_v49  ;;  %v631_v1 = vadd.f32 %v630_v55, %v629_v46 }
 0x397   :  { %v957_v36 = vunpack.c.l.s4 %v1263_v54  ;;  %v960_v44 = vshrl.u32 %v959_v40, 7 }
 0x398   :  { %v859_v5 = vsel %vm778_vm5, %v604_v61, %v586_v59  ;;  %v858_v6 = vsel %vm778_vm5, %v595_v62, %v577_v60  ;;  %v645_v7 = vmul.f32 0.03125, %v640_v63  ;;  %v644_v8 = vmul.f32 0.03125, %v631_v1 }
 0x399   :  { %926 = vmatprep.mubr.f32.mxu0 %v859_v5  ;;  %v958_v42 = vunpack.c.0.s8 %v957_v36  ;;  %v980_v55 = vsub.s32 0, %v960_v44  ;;  %v984_v56 = vsub.s32 1, %v960_v44 }
 0x39a   :  { %927 = vmatmul.mubr.f32.vlgmr.msra.gmra.mxu0 %v858_v6  ;;  %v780_v9 = vsel %vm778_vm5, %v645_v7, %v643_v3  ;;  %v779_v10 = vsel %vm778_vm5, %v644_v8, %v642_v4 }
 0x39b   :  { %847 = vmatprep.mubr.f32.mxu1 %v780_v9  ;;  %v961_v48 = vsub.s32 %v958_v42, %v960_v44 }
 0x39c   :  { %848 = vmatmul.mubr.f32.vlgmr.msra.gmra.mxu1 %v779_v10 }
 0x45a   :  { %v928_v37 = vpop.f32.mrf.mxu0 }
 0x45c   :  { %v849_v43 = vpop.f32.mrf.mxu1  ;;  %v930_v23 = vpop.f32.mrf.mxu0 }
 0x45d   :  { %v929_v27 = vadd.f32 %v928_v37, %v849_v43 }
 0x45e   :  { %v851_v18 = vpop.f32.mrf.mxu1 }
 0x45f   :  { %v935_v17 = vmul.f32 %v934_v16, %v929_v27  ;;  %v931_v45 = vadd.f32 %v930_v23, %v851_v18 }
 0x461   :  { %v939_v20 = vadd.f32 %v938_v28, %v935_v17  ;;  %v936_v21 = vmul.f32 %v934_v16, %v931_v45 }
 0x463   :  { %v941_v22 = vsub.f32 0.0, %v939_v20  ;;  %v940_v25 = vadd.f32 %v938_v28, %v936_v21 }
 0x465   :  { %v943_v29 = vmul.f32 1.442695, %v941_v22  ;;  %v942_v30 = vsub.f32 0.0, %v940_v25 }
 0x467   :  { %1156 = vpow2.f32 %v943_v29  ;;  %v945_v31 = vmul.f32 1.442695, %v942_v30 }
 0x469   :  { %1158 = vpow2.f32 %v945_v31 }
 0x474   :  { %v1157_v51 = vpop.eup %1156 }
 0x475   :  { %v947_v32 = vadd.f32 1.0, %v1157_v51 }
 0x476   :  { %v1159_v34 = vpop.eup %1158 }
 0x477   :  { %v948_v35 = vadd.f32 1.0, %v1159_v34  ;;  %1160 = vrcp.f32 %v947_v32 }
 0x479   :  { %1162 = vrcp.f32 %v948_v35 }
 0x484   :  { %v1161_v46 = vpop.eup %1160 }
 0x486   :  { %v1163_v49 = vpop.eup %1162 }
 0x487   :  { %v955_v50 = vcombine.low %v1161_v46, %v1163_v49 }
 0x489   :  { %v962_v53 = vrot.slane %v955_v50, %v961_v48 }
 0x48b   :  { %v963_v57 = vcombine.high %v962_v53, %v962_v53  ;;  %v970_v58 = vrot.slane %v962_v53, %v961_v48 }
 0x48d   :  { %v977_v59 = vrot.slane %v963_v57, %v961_v48  ;;  %v981_v60 = vrot.slane %v970_v58, %v980_v55  ;;  %v985_v61 = vrot.slane %v970_v58, %v984_v56 }
 0x48f   :  { %v989_v62 = vrot.slane %v977_v59, %v980_v55  ;;  %v993_v63 = vrot.slane %v977_v59, %v984_v56  ;;  %v998_v1 = vmul.f32 %v981_v60, %v1509_v11  ;;  %v999_v3 = vmul.f32 %v985_v61, %v1512_v39 }
 0x490   :  { %v1000_v4 = vmul.f32 %v981_v60, %v1515_v12  ;;  %v1001_v5 = vmul.f32 %v985_v61, %v1518_v13  ;;  %v1002_v6 = vmul.f32 %v981_v60, %v1521_v14  ;;  %v1003_v7 = vmul.f32 %v985_v61, %v1524_v15 }
 0x491   :  { %v1004_v8 = vmul.f32 %v981_v60, %v1561_v52  ;;  %v1005_v9 = vmul.f32 %v985_v61, %v1566_v33  ;;  %v1006_v10 = vmul.f32 %v989_v62, %v1533_v24  ;;  %v1007_v11 = vmul.f32 %v993_v63, %v1538_v19  ;;  %1014 = vst [vmem:[#allocation9] sm:$0xff] %v998_v1 }
 0x492   :  { %1015 = vst [vmem:[#allocation9 + $0x8] sm:$0xff] %v999_v3  ;;  %v1008_v39 = vmul.f32 %v989_v62, %v1549_v47  ;;  %v1009_v12 = vmul.f32 %v993_v63, %v1554_v26  ;;  %v1010_v13 = vmul.f32 %v989_v62, %v1575_v38  ;;  %v1011_v14 = vmul.f32 %v993_v63, %v1580_v41 }
 0x493   :  { %1016 = vst [vmem:[#allocation9 + $0x10] sm:$0xff] %v1000_v4  ;;  %1017 = vst [vmem:[#allocation9 + $0x18] sm:$0xff] %v1001_v5  ;;  %v1012_v15 = vmul.f32 %v989_v62, %v1597_v0  ;;  %v1013_v24 = vmul.f32 %v993_v63, %v1602_v2 }
 0x494   :  { %1018 = vst [vmem:[#allocation9 + $0x20] sm:$0xff] %v1002_v6  ;;  %1019 = vst [vmem:[#allocation9 + $0x28] sm:$0xff] %v1003_v7 }
 0x495   :  { %1020 = vst [vmem:[#allocation9 + $0x30] sm:$0xff] %v1004_v8  ;;  %1021 = vst [vmem:[#allocation9 + $0x38] sm:$0xff] %v1005_v9 }
 0x496   :  { %1022 = vst [vmem:[#allocation9 + $0x40] sm:$0xff] %v1006_v10  ;;  %1023 = vst [vmem:[#allocation9 + $0x48] sm:$0xff] %v1007_v11 }
 0x497   :  { %1024 = vst [vmem:[#allocation9 + $0x50] sm:$0xff] %v1008_v39  ;;  %1025 = vst [vmem:[#allocation9 + $0x58] sm:$0xff] %v1009_v12 }
 0x498   :  { %1026 = vst [vmem:[#allocation9 + $0x60] sm:$0xff] %v1010_v13  ;;  %1027 = vst [vmem:[#allocation9 + $0x68] sm:$0xff] %v1011_v14 }
 0x499   :  { %1028 = vst [vmem:[#allocation9 + $0x70] sm:$0xff] %v1012_v15  ;;  %1029 = vst [vmem:[#allocation9 + $0x78] sm:$0xff] %v1013_v24 }
 0x49a   :  { %1237 = shalt.err (!%p1234_p5)
}
 0x49b   :  { %1041 = dma.vmem_to_hbm [thread:$0]  %s1036_s13, 2048, %s1638_s8, [#allocation4], %s1255_s30, %s1255_s30, %s1256_s9  }
 0x49c   :  { %1252 = dma.done.wait [#allocation4], 2048  }
 0x49d   :  { %1253 = vsyncadd [#allocation4], 4294965248 }
 0x49e   :  { %1045 = vsyncpa [#allocation3], 1 }
 0x49f   :  { %1046 = vsyncpa [#allocation7], 1 }
 0x4a0   :  { %1047 = vsyncpa [#allocation4], 1 }
 0x4a1   :  { %1048 = vsyncpa [#allocation5], 1 }

</bundles_post_ra>
